<compile_context>
chip_gen: v7x
topology: tpu7x:2x2x1
jax: 0.10.0
libtpu: 0.0.40
codegen_flags: <defaults>
</compile_context>

<pallas_src>
import math

import numpy as np
import jax
import jax.numpy as jnp
from jax import lax
from jax.experimental import pallas as pl
from jax.experimental.pallas import tpu as pltpu


def _pick_row_tile(X, Y, C, itemsize, budget_bytes=2 << 20):
    """Largest row tile Tx such that the (1, C, Tx, Y) output block fits the
    budget. Tx must divide X and be a multiple of 8 (or equal X) to satisfy the
    BlockSpec (8, 128)-or-full-dim rule on the second-minor dim."""
    if C * X * Y * itemsize <= budget_bytes:
        return X
    best = None
    for tx in range(8, X, 8):
        if X % tx == 0 and C * tx * Y * itemsize <= budget_bytes:
            best = tx  # ascending loop keeps the largest fitting tile
    return best if best is not None else X


def positional_encoding_permute_3d(x, channels):
    """JAX/Pallas equivalent of PositionalEncodingPermute3D(channels)(x).

    x: (B, C, X, Y); only shape/dtype are used. Returns (B, C, X, Y), x.dtype.
    """
    B, C, X, Y = x.shape
    ch_half = int(math.ceil(channels / 2))  # "self.channels" in the PyTorch code
    # PyTorch raises a broadcast error when ch_half is odd; require even here.
    assert ch_half % 2 == 0, "ceil(channels/2) must be even (as in the PyTorch module)"
    assert C <= 2 * ch_half, "input channels exceed encoding width"
    lf = ch_half // 2  # number of inverse frequencies

    # Registered-buffer equivalent. Shaped (lf, 1, 1) so the frequency index is
    # the leading (slab) axis of every in-kernel table.
    inv_freq = (1.0 / (10000.0 ** (
        jnp.arange(0, ch_half, 2, dtype=jnp.float32) / float(ch_half)))
                ).reshape(lf, 1, 1)

    Tx = _pick_row_tile(X, Y, C, jnp.dtype(x.dtype).itemsize)
    n_row_tiles = X // Tx

    def kernel(inv_ref, out_ref):
        # inv_ref: VMEM (lf, 1, 1) f32 inverse frequencies
        # out_ref: VMEM (1, C, Tx, Y) output block for (batch b, row-tile t)
        inv = inv_ref[...]                               # (lf, 1, 1)
        r0 = pl.program_id(1) * Tx                       # first row of this tile

        # Separable tables -- the only transcendentals in the kernel:
        # 2*lf*(Tx + Y) sin/cos per block instead of C*X*Y per batch element.
        pos_x = (lax.broadcasted_iota(jnp.int32, (lf, Tx, 1), 1) + r0
                 ).astype(jnp.float32)                   # row index i
        pos_y = lax.broadcasted_iota(jnp.int32, (lf, 1, Y), 2
                                     ).astype(jnp.float32)  # col index j
        sin_x = jnp.sin(pos_x * inv)                     # (lf, Tx, 1)
        cos_x = jnp.cos(pos_x * inv)                     # (lf, Tx, 1)
        sin_y = jnp.sin(pos_y * inv)                     # (lf, 1, Y)
        cos_y = jnp.cos(pos_y * inv)                     # (lf, 1, Y)

        # Vectorized channel-section stores: four broadcast slabs, no
        # per-channel unroll; only the first C channels are kept (truncation
        # of the last cos-y section when C < 4*lf).
        for tab, start in ((sin_x, 0), (cos_x, lf),
                           (sin_y, 2 * lf), (cos_y, 3 * lf)):
            stop = min(start + lf, C)                    # static Python int
            if stop > start:
                n = stop - start
                out_ref[0, start:stop, :, :] = jnp.broadcast_to(
                    tab[:n], (n, Tx, Y)).astype(out_ref.dtype)

    out = pl.pallas_call(
        kernel,
        grid=(B, n_row_tiles),
        in_specs=[pl.BlockSpec((lf, 1, 1), lambda b, t: (0, 0, 0))],
        out_specs=pl.BlockSpec((1, C, Tx, Y), lambda b, t: (b, 0, t, 0)),
        out_shape=jax.ShapeDtypeStruct((B, C, X, Y), x.dtype),
        compiler_params=pltpu.CompilerParams(
            dimension_semantics=("parallel", "parallel")),
    )(inv_freq)
    return out


def _reference(x, channels):
    """Pure NumPy re-implementation of the PyTorch forward (for verification)."""
    B, C, X, Y = x.shape
    ch_half = int(np.ceil(channels / 2))
    inv = 1.0 / (10000.0 ** (np.arange(0, ch_half, 2, dtype=np.float32) / ch_half))
    pos_x = np.arange(X, dtype=np.float32)
    pos_y = np.arange(Y, dtype=np.float32)
    sin_inp_x = np.einsum("i,j->ij", pos_x, inv)
    sin_inp_y = np.einsum("i,j->ij", pos_y, inv)
    emb_x = np.concatenate([np.sin(sin_inp_x), np.cos(sin_inp_x)], -1)[:, None, :]
    emb_y = np.concatenate([np.sin(sin_inp_y), np.cos(sin_inp_y)], -1)
    emb = np.zeros((X, Y, ch_half * 2), dtype=np.float32)
    emb[:, :, :ch_half] = emb_x
    emb[:, :, ch_half:2 * ch_half] = emb_y
    enc = np.broadcast_to(emb[None, :, :, :C], (B, X, Y, C))
    return np.transpose(enc, (0, 3, 1, 2)).astype(x.dtype)


if __name__ == "__main__":
    key = jax.random.PRNGKey(0)

    # Case 1: typical use, channels == C (values of x are unused by the op).
    x1 = jax.random.normal(key, (2, 8, 16, 16), dtype=jnp.float32)
    out1 = jax.block_until_ready(positional_encoding_permute_3d(x1, channels=8))
    np.testing.assert_allclose(np.asarray(out1), _reference(np.asarray(x1), 8),
                               rtol=1e-5, atol=1e-5)

    # Case 2: odd channel count (last cos-y section truncated) and X != Y.
    x2 = jax.random.normal(jax.random.PRNGKey(0), (1, 7, 8, 16), dtype=jnp.float32)
    out2 = jax.block_until_ready(positional_encoding_permute_3d(x2, channels=7))
    np.testing.assert_allclose(np.asarray(out2), _reference(np.asarray(x2), 7),
                               rtol=1e-5, atol=1e-5)

    print("KERNEL_OK")
</pallas_src>

<mosaic_0001>
module attributes {stable_mosaic.version = 11 : i64} {
  func.func @kernel(%arg0: i32, %arg1: i32, %arg2: memref<2x1x1xf32, #tpu.memory_space<vmem>>, %arg3: memref<1x8x16x16xf32, #tpu.memory_space<vmem>>) attributes {dimension_semantics = [#tpu.dimension_semantics<parallel>, #tpu.dimension_semantics<parallel>], iteration_bounds = array<i64: 2, 1>, scalar_prefetch = 0 : i64, scratch_operands = 0 : i64, tpu.core_type = #tpu.core_type<tc>, window_params = [{pipeline_mode = #tpu.pipeline_mode<synchronous>, transform_indices = @transform_0, window_bounds = array<i64: 2, 1, 1>}, {transform_indices = @transform_1, window_bounds = array<i64: 1, 8, 16, 16>}]} {
    %c0 = arith.constant 0 : index
    %c0_0 = arith.constant 0 : index
    %c0_1 = arith.constant 0 : index
    %0 = vector.load %arg2[%c0, %c0_0, %c0_1] : memref<2x1x1xf32, #tpu.memory_space<vmem>>, vector<2x1x1xf32>
    %c16_i32 = arith.constant 16 : i32
    %1 = arith.muli %arg1, %c16_i32 : i32
    %2 = tpu.iota {dimensions = array<i32: 1>} : vector<2x16x1xi32>
    %3 = vector.broadcast %1 : i32 to vector<2x16x1xi32>
    %4 = arith.addi %2, %3 : vector<2x16x1xi32>
    %5 = arith.sitofp %4 : vector<2x16x1xi32> to vector<2x16x1xf32>
    %6 = tpu.iota {dimensions = array<i32: 2>} : vector<2x1x16xi32>
    %7 = arith.sitofp %6 : vector<2x1x16xi32> to vector<2x1x16xf32>
    %8 = vector.broadcast %0 : vector<2x1x1xf32> to vector<2x16x1xf32>
    %9 = arith.mulf %5, %8 : vector<2x16x1xf32>
    %10 = math.sin %9 : vector<2x16x1xf32>
    %11 = vector.broadcast %0 : vector<2x1x1xf32> to vector<2x16x1xf32>
    %12 = arith.mulf %5, %11 : vector<2x16x1xf32>
    %13 = math.cos %12 : vector<2x16x1xf32>
    %14 = vector.broadcast %0 : vector<2x1x1xf32> to vector<2x1x16xf32>
    %15 = arith.mulf %7, %14 : vector<2x1x16xf32>
    %16 = math.sin %15 : vector<2x1x16xf32>
    %17 = vector.broadcast %0 : vector<2x1x1xf32> to vector<2x1x16xf32>
    %18 = arith.mulf %7, %17 : vector<2x1x16xf32>
    %19 = math.cos %18 : vector<2x1x16xf32>
    %20 = vector.shape_cast %10 : vector<2x16x1xf32> to vector<2x16x1xf32>
    %21 = vector.broadcast %20 : vector<2x16x1xf32> to vector<2x16x16xf32>
    %c0_2 = arith.constant 0 : index
    %c0_3 = arith.constant 0 : index
    %c0_4 = arith.constant 0 : index
    %c0_5 = arith.constant 0 : index
    %22 = vector.load %arg3[%c0_2, %c0_3, %c0_4, %c0_5] : memref<1x8x16x16xf32, #tpu.memory_space<vmem>>, vector<1x2x16x16xf32>
    %23 = vector.shape_cast %22 : vector<1x2x16x16xf32> to vector<2x16x16xf32>
    %24 = vector.shape_cast %21 : vector<2x16x16xf32> to vector<1x2x16x16xf32>
    tpu.vector_store %arg3[%c0_2, %c0_3, %c0_4, %c0_5], %24 {strides = array<i32>} : memref<1x8x16x16xf32, #tpu.memory_space<vmem>>, vector<1x2x16x16xf32>,
    %25 = vector.shape_cast %13 : vector<2x16x1xf32> to vector<2x16x1xf32>
    %26 = vector.broadcast %25 : vector<2x16x1xf32> to vector<2x16x16xf32>
    %c0_6 = arith.constant 0 : index
    %c2 = arith.constant 2 : index
    %c0_7 = arith.constant 0 : index
    %c0_8 = arith.constant 0 : index
    %27 = vector.load %arg3[%c0_6, %c2, %c0_7, %c0_8] : memref<1x8x16x16xf32, #tpu.memory_space<vmem>>, vector<1x2x16x16xf32>
    %28 = vector.shape_cast %27 : vector<1x2x16x16xf32> to vector<2x16x16xf32>
    %29 = vector.shape_cast %26 : vector<2x16x16xf32> to vector<1x2x16x16xf32>
    tpu.vector_store %arg3[%c0_6, %c2, %c0_7, %c0_8], %29 {strides = array<i32>} : memref<1x8x16x16xf32, #tpu.memory_space<vmem>>, vector<1x2x16x16xf32>,
    %30 = vector.shape_cast %16 : vector<2x1x16xf32> to vector<2x1x16xf32>
    %31 = vector.broadcast %30 : vector<2x1x16xf32> to vector<2x16x16xf32>
    %c0_9 = arith.constant 0 : index
    %c4 = arith.constant 4 : index
    %c0_10 = arith.constant 0 : index
    %c0_11 = arith.constant 0 : index
    %32 = vector.load %arg3[%c0_9, %c4, %c0_10, %c0_11] : memref<1x8x16x16xf32, #tpu.memory_space<vmem>>, vector<1x2x16x16xf32>
    %33 = vector.shape_cast %32 : vector<1x2x16x16xf32> to vector<2x16x16xf32>
    %34 = vector.shape_cast %31 : vector<2x16x16xf32> to vector<1x2x16x16xf32>
    tpu.vector_store %arg3[%c0_9, %c4, %c0_10, %c0_11], %34 {strides = array<i32>} : memref<1x8x16x16xf32, #tpu.memory_space<vmem>>, vector<1x2x16x16xf32>,
    %35 = vector.shape_cast %19 : vector<2x1x16xf32> to vector<2x1x16xf32>
    %36 = vector.broadcast %35 : vector<2x1x16xf32> to vector<2x16x16xf32>
    %c0_12 = arith.constant 0 : index
    %c6 = arith.constant 6 : index
    %c0_13 = arith.constant 0 : index
    %c0_14 = arith.constant 0 : index
    %37 = vector.load %arg3[%c0_12, %c6, %c0_13, %c0_14] : memref<1x8x16x16xf32, #tpu.memory_space<vmem>>, vector<1x2x16x16xf32>
    %38 = vector.shape_cast %37 : vector<1x2x16x16xf32> to vector<2x16x16xf32>
    %39 = vector.shape_cast %36 : vector<2x16x16xf32> to vector<1x2x16x16xf32>
    tpu.vector_store %arg3[%c0_12, %c6, %c0_13, %c0_14], %39 {strides = array<i32>} : memref<1x8x16x16xf32, #tpu.memory_space<vmem>>, vector<1x2x16x16xf32>,
    return
  }
  func.func @transform_0(%arg0: i32, %arg1: i32) -> (i32, i32, i32) {
    %c0_i32 = arith.constant 0 : i32
    %c0_i32_0 = arith.constant 0 : i32
    %c0_i32_1 = arith.constant 0 : i32
    %c0_i32_2 = arith.constant 0 : i32
    return %c0_i32, %c0_i32_0, %c0_i32_1 : i32, i32, i32
  }
  func.func @transform_1(%arg0: i32, %arg1: i32) -> (i32, i32, i32, i32) {
    %c0_i32 = arith.constant 0 : i32
    %c0_i32_0 = arith.constant 0 : i32
    %c0_i32_1 = arith.constant 0 : i32
    return %arg0, %c0_i32, %arg1, %c0_i32_0 : i32, i32, i32, i32
  }
}

</mosaic_0001>

<bundles_post_ra>
// kernel: tpu_custom_call.1
= control target key start
LH: loop header
LB: loop body
LE: loop exit
PB: predicated region body
PF: predicated region fallthrough
CT: control target
= control target key end

     0   :  { %6 = vsyncpa [#allocation3], 0  ;;  %s2473_s0 = inlined_call_operand.vmem [shape: f32[2,1,1], index: 0, kind: input, shape index: {}]   ;;  %s2474_s1 = inlined_call_operand.hbm [shape: f32[2,8,16,16], index: 1, kind: output, shape index: {}]  }
   0x1   :  { %8 = vsyncpa [#allocation3 + $0x1], 0  ;;  %s1822_s6 = smov 0   ;;  %s1824_s7 = smov 0  }
   0x2   :  { %s1826_s8 = smov 0   ;;  %s1828_s9 = smov 0  }
   0x3   :  { %s1830_s10 = smov 0   ;;  %s1832_s11 = smov 0  }
   0x4 LB: > { %s1537_s12 = sadd.s32 4294967295, %s1800_s11   ;;  %s1538_s13 = sadd.s32 4294967294, %s1800_s11   ;;  %s1800_s11 = sphi %s1832_s11, %s14_s11   ;;  %s1796_s10 = sphi %s1830_s10, %s2489_s10   ;;  %s1792_s9 = sphi %s1828_s9, %s2488_s9   ;;  %s1788_s8 = sphi %s1826_s8, %s2487_s8   ;;  %s1784_s7 = sphi %s1824_s7, %s2486_s7   ;;  %s1780_s6 = sphi %s1822_s6, %s2485_s6  }
   0x5   : > { %s26_s14 = sadd.s32 1, %s1796_s10  ;;  %s56_s15 = sadd.s32 1, %s1788_s8 }
   0x6   : > { %p28_p0 = scmp.ge.s32.totalorder %s26_s14, 2  ;;  %p66_p1 = scmp.ne.s32.totalorder %s1788_s8, %s1784_s7 }
   0x7   : > { %p67_p2 = scmp.eq.s32.totalorder %s1537_s12, 1  ;;  %p72_p3 = scmp.ne.s32.totalorder %s1784_s7, %s1780_s6 }
   0x8   : > { %s2491_s14 = smov (%p28_p0, %s26_s14), 0  ;;  %p73_p5 = scmp.eq.s32.totalorder %s1538_s13, 1 }
   0x9   : > { %p1862_p4 = por %p67_p2, %p66_p1  ;;  %s51_s17 = ssub.s32 %s1796_s10, %s2491_s14 }
   0xa   : > { %p1540_p6 = scmp.ge.s32.totalorder %s1800_s11, 1  ;;  %p54_p7 = scmp.eq.s32.totalorder %s51_s17, 0 }
   0xb   : > { %p1869_p8 = por %p73_p5, %p72_p3  ;;  %p94_p9 = scmp.lt.s32.totalorder %s1800_s11, 3 }
   0xc   : > { %s1875_s19 = scalar_select %p54_p7, %s1788_s8, %s56_s15  }
   0xd   : > { %p95_p10 = pnand %p1540_p6, %p94_p9 }
   0xe   : > { %v110_v0 = vld [vmem:[%s2473_s0] sm:$0x1] (!%p95_p10)  ;;  %v113_v1 = vlaneseq (!%p95_p10)  ;;  %v1802_v2 = vmov (!%p95_p10), 0   ;;  %v111_v4 = vld [vmem:[%s2473_s0 + $0x1] sm:$0x1] (!%p95_p10)  ;;  %s106_s24 = sand.u32 (!%p95_p10), 1, %s1784_s7  }
   0xf   : > { %98 = sbr.rel (%p95_p10) target bundleno = 318 (0x13e), region = 24  ;;  %1696 = vset.pattern.permute.xlu0 (!%p95_p10), %v1802_v2  ;;  %1697 = vset.pattern.permute.xlu1 (!%p95_p10), %v1802_v2  ;;  %v1803_v44 = vmov (!%p95_p10), 683565275   ;;  %v1804_v49 = vmov (!%p95_p10), 2475754826   ;;  %s1541_s25 = sshll.u32 (!%p95_p10), %s106_s24, 7 }
  0x10   : > { %v114_v3 = vshrl.u32 (!%p95_p10), %v113_v1, 7  ;;  %969 = vperm.xlu0 (!%p95_p10), %1696, %v110_v0   ;;  %v1805_v51 = vmov (!%p95_p10), 2131351028   ;;  %v1806_v56 = vmov (!%p95_p10), 2102212464   ;;  %s2381_s26 = scalar_lea.vmem (!%p95_p10), [#allocation2], %s1541_s25 }
  0x11   : > { %v1807_v61 = vmov (!%p95_p10), 920167782   ;;  %s1607_s27 = sshll.u32 (!%p95_p10), %s1792_s9, 11  ;;  %s1476_s28 = sshll.u32 (!%p95_p10), %s2381_s26, 4  ;;  %s2421_s28 = int_to_ptr.vmem [resolvable:$true] %s1476_s28 }
  0x12   : > { %v115_v5 = vadd.s32 (!%p95_p10), 8, %v114_v3  ;;  %v119_v6 = vcvt.s32.f32 (!%p95_p10), %v114_v3  ;;  %v1884_v7 = vsub.s32 (!%p95_p10), 0, %v114_v3  ;;  %s2419_s2 = scalar_lea.hbm (!%p95_p10), %s2474_s1, %s1607_s27  ;;  %s2427_s3 = scalar_lea.sflag (!%p95_p10), [#allocation3], %s106_s24 }
  0x13   : > { %s1722_s4 = scalar_lea.vmem (!%p95_p10), %s2421_s28, 2048  ;;  %s1809_s5 = smov (!%p95_p10), [#allocation2]  }
  0x14   : > { %v120_v8 = vcvt.s32.f32 (!%p95_p10), %v115_v5  ;;  %v129_v9 = vrot.slane (!%p95_p10), %v110_v0, %v1884_v7  ;;  %v133_v10 = vrot.slane (!%p95_p10), %v111_v4, %v1884_v7  ;;  %977 = vperm.xlu0 (!%p95_p10), %1696, %v111_v4   ;;  %p1723_p11 = scmp.ne.s32.totalorder (!%p95_p10), %s2421_s28, %s1722_s4  ;;  %s1726_s9 = sshll.u32 (!%p95_p10), %s1809_s5, 4  ;;  %s1727_s9 = int_to_ptr.vmem [resolvable:$false] %s1726_s9 }
  0x15   : > { %s1728_s12 = scalar_lea.vmem (!%p95_p10), %s1727_s9, 4096  ;;  %p1729_p0 = scmp.lt.s32.totalorder (!%p95_p10), %s2421_s28, %s1727_s9 }
  0x16   : > { %v1888_v11 = vmul.f32 %v129_v9, %v119_v6  ;;  %v1890_v12 = vmul.f32 %v129_v9, %v120_v8  ;;  %v1892_v13 = vmul.f32 %v133_v10, %v119_v6  ;;  %v1898_v21 = vmul.f32 %v133_v10, %v120_v8  ;;  %p1724_p12 = pnand %p1723_p11, %p1862_p4  ;;  %p1730_p1 = scmp.lt.s32.totalorder %s1728_s12, %s1722_s4 }
  0x17   : > { %v1808_v8 = vmov 1326507024  }
  0x18   : > { %v143_v14 = vand.u32 2139095040, %v1888_v11  ;;  %v247_v15 = vand.u32 2139095040, %v1890_v12  ;;  %v351_v16 = vand.u32 2139095040, %v1892_v13  ;;  %v348_v17 = vand.u32 2147483647, %v1892_v13  ;;  %p1725_p13 = pneg %p1724_p12  ;;  %p1731_p2 = por %p1730_p1, %p1729_p0 }
  0x19   : > { %v140_v26 = vand.u32 2147483647, %v1888_v11  ;;  %v455_v30 = vand.u32 2139095040, %v1898_v21  ;;  %v244_v41 = vand.u32 2147483647, %v1890_v12 }
  0x1a   : > { %v144_v18 = vshrl.u32 %v143_v14, 23  ;;  %v248_v19 = vshrl.u32 %v247_v15, 23  ;;  %v352_v20 = vshrl.u32 %v351_v16, 23  ;;  %v355_v25 = vand.u32 8388607, %v348_v17  ;;  %p1732_p3 = pnand %p1731_p2, %p1725_p13 }
  0x1b   : > { %v1906_v35 = vand.u32 8388607, %v140_v26  ;;  %v1912_v39 = vshrl.u32 %v455_v30, 23 }
  0x1c   : > { %v1542_v22 = vadd.s32 4294967169, %v144_v18  ;;  %v1546_v23 = vadd.s32 4294967169, %v248_v19  ;;  %v1550_v24 = vadd.s32 4294967169, %v352_v20  ;;  %v356_v31 = vor.u32 8388608, %v355_v25 }
  0x1d   : > { %v148_v46 = vor.u32 8388608, %v1906_v35 }
  0x1e   : > { %v150_v27 = vadd.s32 1, %v1542_v22  ;;  %v254_v28 = vadd.s32 1, %v1546_v23  ;;  %v358_v29 = vadd.s32 1, %v1550_v24  ;;  %v1914_v40 = vshll.u32 %v356_v31, 8 }
  0x20   : > { %vm151_vm0 = vcmp.gt.s32.totalorder %v150_v27, 0  ;;  %vm255_vm1 = vcmp.gt.s32.totalorder %v254_v28, 0  ;;  %vm359_vm2 = vcmp.gt.s32.totalorder %v358_v29, 0 }
  0x21   : > { %v152_v32 = vsel %vm151_vm0, %v150_v27, 0  ;;  %v256_v33 = vsel %vm255_vm1, %v254_v28, 0  ;;  %v360_v34 = vsel %vm359_vm2, %v358_v29, 0 }
  0x22   : > { %v1908_v36 = vand.u32 31, %v152_v32  ;;  %v362_v37 = vand.u32 31, %v360_v34  ;;  %v1910_v38 = vand.u32 31, %v256_v33  ;;  %v1917_v42 = vshrl.u32 %v152_v32, 5 }
  0x23   : > { %v1921_v47 = vshrl.u32 %v256_v33, 5  ;;  %v361_v48 = vshrl.u32 %v360_v34, 5 }
  0x24   : > { %v363_v43 = vsub.s32 32, %v362_v37  ;;  %v365_v45 = vshll.u32 %v1803_v44, %v362_v37  ;;  %v368_v50 = vshll.u32 %v1804_v49, %v362_v37  ;;  %v371_v52 = vshll.u32 %v1805_v51, %v362_v37 }
  0x25   : > { %v155_v53 = vsub.s32 32, %v1908_v36  ;;  %v1930_v58 = vsub.s32 32, %v1910_v38  ;;  %v374_v60 = vshll.u32 %v1806_v56, %v362_v37  ;;  %v377_v3 = vshll.u32 %v1807_v61, %v362_v37 }
  0x26   : > { %v366_v54 = vshrl.u32 %v1804_v49, %v363_v43  ;;  %v369_v55 = vshrl.u32 %v1805_v51, %v363_v43  ;;  %v372_v57 = vshrl.u32 %v1806_v56, %v363_v43  ;;  %v364_v59 = vshrl.u32 %v1803_v44, %v363_v43 }
  0x27   : > { %v375_v62 = vshrl.u32 %v1807_v61, %v363_v43  ;;  %v1938_v4 = vshll.u32 %v1806_v56, %v1910_v38  ;;  %v1942_v5 = vshll.u32 %v1807_v61, %v1910_v38  ;;  %v378_v9 = vshrl.u32 %v1808_v8, %v363_v43 }
  0x28   : > { %v367_v63 = vor.u32 %v366_v54, %v365_v45  ;;  %v370_v0 = vor.u32 %v369_v55, %v368_v50  ;;  %v373_v2 = vor.u32 %v372_v57, %v371_v52  ;;  %vm380_vm3 = vcmp.lt.s32.totalorder %v361_v48, 1 }
  0x29   : > { %v376_v6 = vor.u32 %v375_v62, %v374_v60  ;;  %vm381_vm4 = vcmp.lt.s32.totalorder %v361_v48, 2  ;;  %vm382_vm5 = vcmp.lt.s32.totalorder %v361_v48, 3  ;;  %vm383_vm6 = vcmp.lt.s32.totalorder %v361_v48, 4 }
  0x2a   : > { %v379_v10 = vor.u32 %v378_v9, %v377_v3  ;;  %v384_v14 = vsel %vm380_vm3, %v364_v59, %v367_v63  ;;  %v385_v15 = vsel %vm383_vm6, %v373_v2, 2102212464  ;;  %v388_v16 = vsel %vm380_vm3, %v367_v63, %v370_v0 }
  0x2b   : > { %v386_v18 = vsel %vm382_vm5, %v370_v0, %v385_v15  ;;  %v389_v19 = vsel %vm383_vm6, %v376_v6, 920167782  ;;  %v392_v20 = vsel %vm380_vm3, %v370_v0, %v373_v2  ;;  %v156_v22 = vshrl.u32 %v1803_v44, %v155_v53 }
  0x2c   : > { %v387_v23 = vsel %vm381_vm4, %v384_v14, %v386_v18  ;;  %v390_v24 = vsel %vm382_vm5, %v373_v2, %v389_v19  ;;  %v393_v25 = vsel %vm383_vm6, %v379_v10, 1326507024  ;;  %v157_v27 = vshll.u32 %v1803_v44, %v1908_v36 }
  0x2d   : > { %v391_v28 = vsel %vm381_vm4, %v388_v16, %v390_v24  ;;  %v394_v29 = vsel %vm382_vm5, %v376_v6, %v393_v25  ;;  %v403_v30 = vmul.u32 %v1914_v40, %v387_v23  ;;  %v158_v31 = vshrl.u32 %v1804_v49, %v155_v53 }
  0x2e   : > { %v395_v32 = vsel %vm381_vm4, %v392_v20, %v394_v29  ;;  %v1954_v33 = vmul.u32.u64.low %v1914_v40, %v391_v28  ;;  %v1955_v34 = vmul.u32.u64.high %v1914_v40, %v391_v28, %v1954_v33  ;;  %v160_v37 = vshll.u32 %v1804_v49, %v1908_v36 }
  0x2f   : > { %v1961_v43 = vmul.u32.u64.low %v1914_v40, %v395_v32  ;;  %v1962_v45 = vmul.u32.u64.high %v1914_v40, %v395_v32, %v1961_v43  ;;  %v159_v50 = vor.u32 %v158_v31, %v157_v27  ;;  %v161_v52 = vshrl.u32 %v1805_v51, %v155_v53 }
  0x30   : > { %v163_v54 = vshll.u32 %v1805_v51, %v1908_v36  ;;  %v164_v48 = vshrl.u32 %v1806_v56, %v155_v53  ;;  %v166_v55 = vshll.u32 %v1806_v56, %v1908_v36  ;;  %v167_v57 = vshrl.u32 %v1807_v61, %v155_v53 }
  0x31   : > { %v162_v59 = vor.u32 %v161_v52, %v160_v37  ;;  %v169_v60 = vshll.u32 %v1807_v61, %v1908_v36  ;;  %v170_v40 = vshrl.u32 %v1808_v8, %v155_v53  ;;  %vm172_vm7 = vcmp.lt.s32.totalorder %v1917_v42, 1 }
  0x32   : > { %v271_v62 = vshrl.u32 %v1807_v61, %v1930_v58  ;;  %v406_v63 = vadd.s32 1, %v1955_v34  ;;  %v165_v0 = vor.u32 %v164_v48, %v163_v54  ;;  %v168_v2 = vor.u32 %v167_v57, %v166_v55 }
  0x33   : > { %vm405_vm8 = vc.u32 %v1962_v45, %v1954_v33  ;;  %v171_v3 = vor.u32 %v170_v40, %v169_v60  ;;  %vm173_vm9 = vcmp.lt.s32.totalorder %v1917_v42, 2  ;;  %vm174_vm10 = vcmp.lt.s32.totalorder %v1917_v42, 3 }
  0x34   : > { %v407_v36 = vsel %vm405_vm8, %v406_v63, %v1955_v34  ;;  %vm175_vm11 = vcmp.lt.s32.totalorder %v1917_v42, 4  ;;  %v176_v53 = vsel %vm172_vm7, %v156_v22, %v159_v50  ;;  %v180_v6 = vsel %vm172_vm7, %v159_v50, %v162_v59 }
  0x35   : > { %v408_v9 = vadd.s32 %v407_v36, %v403_v30  ;;  %v177_v10 = vsel %vm175_vm11, %v165_v0, 2102212464  ;;  %v181_v14 = vsel %vm175_vm11, %v168_v2, 920167782  ;;  %v184_v15 = vsel %vm172_vm7, %v162_v59, %v165_v0 }
  0x36   : > { %v178_v16 = vsel %vm174_vm10, %v162_v59, %v177_v10  ;;  %v182_v18 = vsel %vm174_vm10, %v165_v0, %v181_v14  ;;  %v185_v19 = vsel %vm175_vm11, %v171_v3, 1326507024  ;;  %v188_v20 = vshll.u32 %v148_v46, 8 }
  0x37   : > { %v274_v22 = vshrl.u32 %v1808_v8, %v1930_v58  ;;  %v409_v23 = vadd.s32 536870912, %v408_v9  ;;  %v183_v24 = vsel %vm173_vm9, %v180_v6, %v182_v18  ;;  %v186_v25 = vsel %vm174_vm10, %v168_v2, %v185_v19 }
  0x38   : > { %v179_v27 = vsel %vm173_vm9, %v176_v53, %v178_v16  ;;  %v187_v28 = vsel %vm173_vm9, %v184_v15, %v186_v25  ;;  %v2006_v29 = vmul.u32.u64.low %v188_v20, %v183_v24  ;;  %v2007_v30 = vmul.u32.u64.high %v188_v20, %v183_v24, %v2006_v29 }
  0x39   : > { %v272_v35 = vor.u32 %v271_v62, %v1938_v4  ;;  %v2011_v46 = vshrl.u32 %v409_v23, 30  ;;  %v2013_v31 = vmul.u32.u64.low %v188_v20, %v187_v28  ;;  %v2014_v32 = vmul.u32.u64.high %v188_v20, %v187_v28, %v2013_v31 }
  0x3a   : > { %vm279_vm12 = vcmp.lt.s32.totalorder %v1921_v47, 4  ;;  %v261_v34 = vshll.u32 %v1803_v44, %v1910_v38  ;;  %v262_v42 = vshrl.u32 %v1804_v49, %v1930_v58  ;;  %v264_v37 = vshll.u32 %v1804_v49, %v1910_v38 }
  0x3b   : > { %v1554_v43 = vadd.s32 4294967169, %v1912_v39  ;;  %v411_v4 = vshll.u32 %v2011_v46, 30  ;;  %v195_v50 = vmul.u32 %v188_v20, %v179_v27  ;;  %v265_v52 = vshrl.u32 %v1805_v51, %v1930_v58 }
  0x3c   : > { %v198_v54 = vadd.s32 1, %v2007_v30  ;;  %v251_v48 = vand.u32 8388607, %v244_v41  ;;  %v267_v55 = vshll.u32 %v1805_v51, %v1910_v38  ;;  %v268_v57 = vshrl.u32 %v1806_v56, %v1930_v58 }
  0x3d   : > { %v275_v59 = vor.u32 %v274_v22, %v1942_v5  ;;  %v285_v39 = vsel %vm279_vm12, %v272_v35, 920167782  ;;  %v412_v60 = vsub.s32 %v408_v9, %v411_v4  ;;  %vm197_vm13 = vc.u32 %v2014_v32, %v2006_v29 }
  0x3e   : > { %v199_v40 = vsel %vm197_vm13, %v198_v54, %v2007_v30  ;;  %v263_v62 = vor.u32 %v262_v42, %v261_v34  ;;  %v266_v63 = vor.u32 %v265_v52, %v264_v37  ;;  %v269_v0 = vor.u32 %v268_v57, %v267_v55 }
  0x3f   : > { %v414_v2 = vsub.s32 0, %v412_v60  ;;  %v200_v3 = vadd.s32 %v199_v40, %v195_v50  ;;  %v260_v38 = vshrl.u32 %v1803_v44, %v1930_v58  ;;  %vm276_vm14 = vcmp.lt.s32.totalorder %v1921_v47, 1 }
  0x40   : > { %v462_v5 = vadd.s32 1, %v1554_v43  ;;  %v252_v36 = vor.u32 8388608, %v251_v48  ;;  %vm278_vm15 = vcmp.lt.s32.totalorder %v1921_v47, 3  ;;  %v281_v53 = vsel %vm279_vm12, %v269_v0, 2102212464 }
  0x41   : > { %v289_v6 = vsel %vm279_vm12, %v275_v59, 1326507024  ;;  %v1551_v9 = vmin.u32 %v414_v2, %v412_v60  ;;  %v201_v10 = vadd.s32 536870912, %v200_v3  ;;  %vm277_vm0 = vcmp.lt.s32.totalorder %v1921_v47, 2 }
  0x42   : > { %v284_v14 = vsel %vm276_vm14, %v263_v62, %v266_v63  ;;  %v286_v15 = vsel %vm278_vm15, %v269_v0, %v285_v39  ;;  %v288_v16 = vsel %vm276_vm14, %v266_v63, %v269_v0  ;;  %v280_v18 = vsel %vm276_vm14, %v260_v38, %v263_v62 }
  0x43   : > { %v416_v58 = vclz %v1551_v9  ;;  %v282_v19 = vsel %vm278_vm15, %v266_v63, %v281_v53  ;;  %v202_v20 = vshrl.u32 %v201_v10, 30  ;;  %v287_v22 = vsel %vm277_vm0, %v284_v14, %v286_v15 }
  0x44   : > { %v290_v23 = vsel %vm278_vm15, %v272_v35, %v289_v6  ;;  %v292_v24 = vshll.u32 %v252_v36, 8  ;;  %vm463_vm1 = vcmp.gt.s32.totalorder %v462_v5, 0  ;;  %v404_v25 = vadd.s32 %v1954_v33, %v1962_v45 }
  0x45   : > { %v1552_v27 = vadd.s32 4294967294, %v416_v58  ;;  %v291_v28 = vsel %vm277_vm0, %v288_v16, %v290_v23  ;;  %v434_v30 = vsub.s32 4, %v2011_v46  ;;  %v203_v31 = vshll.u32 %v202_v20, 30 }
  0x46   : > { %v2056_v34 = vmul.u32.u64.low %v292_v24, %v291_v28  ;;  %v2057_v42 = vmul.u32.u64.high %v292_v24, %v291_v28, %v2056_v34  ;;  %v283_v37 = vsel %vm277_vm0, %v280_v18, %v282_v19  ;;  %vm350_vm3 = vcmp.lt.s32.totalorder %v1892_v13, 0 }
  0x47   : > { %vm1553_vm2 = vcmp.lt.s32.totalorder %v1552_v27, 0  ;;  %v2061_v35 = vmul.u32.u64.low %v292_v24, %v287_v22  ;;  %v2062_v43 = vmul.u32.u64.high %v292_v24, %v287_v22, %v2061_v35  ;;  %v204_v33 = vsub.s32 %v200_v3, %v203_v31 }
  0x48   : > { %v419_v4 = vsel %vm1553_vm2, 0, %v1552_v27  ;;  %v464_v54 = vsel %vm463_vm1, %v462_v5, 0  ;;  %v435_v48 = vsel %vm350_vm3, %v434_v30, %v2011_v46  ;;  %v299_v47 = vmul.u32 %v292_v24, %v283_v37 }
  0x49   : > { %v420_v45 = vsub.s32 32, %v419_v4  ;;  %v421_v50 = vshll.u32 %v412_v60, %v419_v4  ;;  %v424_v52 = vsub.s32 4294967266, %v419_v4  ;;  %v206_v55 = vsub.s32 0, %v204_v33 }
  0x4a   : > { %vm301_vm4 = vc.u32 %v2057_v42, %v2061_v35  ;;  %v302_v39 = vadd.s32 1, %v2062_v43  ;;  %v226_v62 = vsub.s32 4, %v202_v20  ;;  %vm2075_vm5 = vcmp.le.f32.partialorder %v348_v17, 0.7853982 }
  0x4b   : > { %v422_v57 = vshrl.u32 %v404_v25, %v420_v45  ;;  %v425_v59 = vadd.s32 127, %v424_v52  ;;  %v1543_v40 = vmin.u32 %v206_v55, %v204_v33  ;;  %v466_v2 = vand.u32 31, %v464_v54 }
  0x4c   : > { %v303_v46 = vsel %vm301_vm4, %v302_v39, %v2062_v43  ;;  %v437_v3 = vsel %vm2075_vm5, 0, %v435_v48  ;;  %vm142_vm6 = vcmp.lt.s32.totalorder %v1888_v11, 0  ;;  %vm2087_vm7 = vcmp.le.f32.partialorder %v140_v26, 0.7853982 }
  0x4d   : > { %v423_v63 = vor.u32 %v422_v57, %v421_v50  ;;  %v426_v0 = vshll.u32 %v425_v59, 23  ;;  %v208_v38 = vclz %v1543_v40  ;;  %v304_v53 = vadd.s32 %v303_v46, %v299_v47 }
  0x4e   : > { %v227_v17 = vsel %vm142_vm6, %v226_v62, %v202_v20  ;;  %v441_v10 = vadd.s32 3, %v437_v3  ;;  %v467_v15 = vsub.s32 32, %v466_v2  ;;  %v196_v58 = vadd.s32 %v2006_v29, %v2014_v32 }
  0x4f   : > { %v427_v5 = vor.u32 4788187, %v426_v0  ;;  %v430_v36 = vcvt.s32.f32 %v423_v63  ;;  %v1544_v6 = vadd.s32 4294967294, %v208_v38  ;;  %v305_v14 = vadd.s32 536870912, %v304_v53 }
  0x50   : > { %v229_v22 = vsel %vm2087_vm7, 0, %v227_v17  ;;  %v2097_v23 = vshrl.u32 %v464_v54, 5  ;;  %v2099_v28 = vand.u32 3, %v441_v10  ;;  %v2102_v31 = vand.u32 3, %v437_v3 }
  0x51   : > { %v428_v9 = vand.u32 2147483647, %v427_v5  ;;  %vm1545_vm8 = vcmp.lt.s32.totalorder %v1544_v6, 0  ;;  %v2095_v20 = vshrl.u32 %v305_v14, 30  ;;  %v2104_v34 = vadd.s32 3, %v229_v22 }
  0x52   : > { %v211_v19 = vsel %vm1545_vm8, 0, %v1544_v6  ;;  %v452_v37 = vand.u32 2147483647, %v1898_v21  ;;  %v470_v45 = vshrl.u32 %v1804_v49, %v467_v15  ;;  %v472_v48 = vshll.u32 %v1804_v49, %v466_v2 }
  0x53   : > { %v431_v18 = vmul.f32 %v430_v36, %v428_v9  ;;  %v212_v24 = vsub.s32 32, %v211_v19  ;;  %v213_v25 = vshll.u32 %v204_v33, %v211_v19  ;;  %v216_v27 = vsub.s32 4294967266, %v211_v19 }
  0x54   : > { %v307_v30 = vshll.u32 %v2095_v20, 30  ;;  %v469_v33 = vshll.u32 %v1803_v44, %v466_v2  ;;  %v473_v47 = vshrl.u32 %v1805_v51, %v467_v15  ;;  %v475_v57 = vshll.u32 %v1805_v51, %v466_v2 }
  0x55   : > { %v432_v26 = vxor.u32 2147483648, %v431_v18  ;;  %v214_v29 = vshrl.u32 %v196_v58, %v212_v24  ;;  %v217_v32 = vadd.s32 127, %v216_v27  ;;  %v476_v40 = vshrl.u32 %v1806_v56, %v467_v15 }
  0x56   : > { %v2109_v4 = vsub.s32 %v304_v53, %v307_v30  ;;  %vm447_vm9 = vcmp.eq.s32.totalorder %v2099_v28, 2  ;;  %v2122_v62 = vand.u32 3, %v229_v22  ;;  %v478_v63 = vshll.u32 %v1806_v56, %v466_v2 }
  0x57   : > { %v433_v43 = vsel %vm350_vm3, %v432_v26, %v431_v18  ;;  %v215_v52 = vor.u32 %v214_v29, %v213_v25  ;;  %v218_v54 = vshll.u32 %v217_v32, 23  ;;  %v479_v0 = vshrl.u32 %v1807_v61, %v467_v15 }
  0x58   : > { %v436_v50 = vsel %vm2075_vm5, %v1892_v13, %v433_v43  ;;  %v310_v55 = vsub.s32 0, %v2109_v4  ;;  %vm444_vm10 = vcmp.eq.s32.totalorder %v2099_v28, 0  ;;  %v459_v3 = vand.u32 8388607, %v452_v37 }
  0x59   : > { %1698 = vcosq.f32 %v436_v50  ;;  %v219_v59 = vor.u32 4788187, %v218_v54  ;;  %v222_v39 = vcvt.s32.f32 %v215_v52  ;;  %v481_v38 = vshll.u32 %v1807_v61, %v466_v2 }
  0x5a   : > { %1700 = vsinq.f32 %v436_v50  ;;  %v1547_v60 = vmin.u32 %v310_v55, %v2109_v4  ;;  %v482_v5 = vshrl.u32 %v1808_v8, %v467_v15  ;;  %vm443_vm11 = vcmp.lt.s32.totalorder %v2099_v28, 2 }
  0x5b   : > { %v220_v46 = vand.u32 2147483647, %v219_v59  ;;  %v300_v36 = vadd.s32 %v2061_v35, %v2057_v42  ;;  %v468_v6 = vshrl.u32 %v1803_v44, %v467_v15  ;;  %v471_v17 = vor.u32 %v470_v45, %v469_v33 }
  0x5c   : > { %v312_v53 = vclz %v1547_v60  ;;  %vm440_vm12 = vweird.f32 %v1892_v13  ;;  %v474_v10 = vor.u32 %v473_v47, %v472_v48  ;;  %v477_v14 = vor.u32 %v476_v40, %v475_v57 }
  0x5d   : > { %v223_v9 = vmul.f32 %v222_v39, %v220_v46  ;;  %v480_v58 = vor.u32 %v479_v0, %v478_v63  ;;  %vm484_vm13 = vcmp.lt.s32.totalorder %v2097_v23, 1  ;;  %vm486_vm14 = vcmp.lt.s32.totalorder %v2097_v23, 3 }
  0x5e   : > { %v1548_v18 = vadd.s32 4294967294, %v312_v53  ;;  %vm487_vm15 = vcmp.lt.s32.totalorder %v2097_v23, 4  ;;  %v460_v19 = vor.u32 8388608, %v459_v3  ;;  %v483_v42 = vor.u32 %v482_v5, %v481_v38 }
  0x5f   : > { %v224_v2 = vxor.u32 2147483648, %v223_v9  ;;  %v493_v35 = vsel %vm487_vm15, %v480_v58, 920167782  ;;  %vm485_vm1 = vcmp.lt.s32.totalorder %v2097_v23, 2  ;;  %v488_v15 = vsel %vm484_vm13, %v468_v6, %v471_v17 }
  0x60   : > { %vm1549_vm0 = vcmp.lt.s32.totalorder %v1548_v18, 0  ;;  %v489_v22 = vsel %vm487_vm15, %v477_v14, 2102212464  ;;  %v492_v27 = vsel %vm484_vm13, %v471_v17, %v474_v10  ;;  %v494_v26 = vsel %vm486_vm14, %v477_v14, %v493_v35 }
  0x61   : > { %v225_v24 = vsel %vm142_vm6, %v224_v2, %v223_v9  ;;  %v315_v25 = vsel %vm1549_vm0, 0, %v1548_v18  ;;  %v496_v52 = vsel %vm484_vm13, %v474_v10, %v477_v14  ;;  %v497_v54 = vsel %vm487_vm15, %v483_v42, 1326507024 }
  0x62   : > { %v228_v29 = vsel %vm2087_vm7, %v1888_v11, %v225_v24  ;;  %v316_v32 = vsub.s32 32, %v315_v25  ;;  %v317_v43 = vshll.u32 %v2109_v4, %v315_v25  ;;  %v320_v33 = vsub.s32 4294967266, %v315_v25 }
  0x63   : > { %v1699_v30 = vpop.eup %1698  ;;  %1702 = vcosq.f32 %v228_v29  ;;  %v490_v4 = vsel %vm486_vm14, %v474_v10, %v489_v22  ;;  %v498_v57 = vsel %vm486_vm14, %v480_v58, %v497_v54  ;;  %v500_v59 = vshll.u32 %v460_v19, 8 }
  0x64   : > { %v1701_v45 = vpop.eup %1700  ;;  %v448_v50 = vxor.u32 2147483648, %v1699_v30  ;;  %1704 = vsinq.f32 %v228_v29  ;;  %v318_v55 = vshrl.u32 %v300_v36, %v316_v32  ;;  %v321_v47 = vadd.s32 127, %v320_v33 }
  0x65   : > { %v445_v48 = vxor.u32 2147483648, %v1701_v45  ;;  %v495_v63 = vsel %vm485_vm1, %v492_v27, %v494_v26  ;;  %v234_v46 = vand.u32 3, %v2104_v34  ;;  %v330_v3 = vsub.s32 4, %v2095_v20 }
  0x66   : > { %v449_v16 = vsel %vm447_vm9, %v448_v50, %v1701_v45  ;;  %v319_v40 = vor.u32 %v318_v55, %v317_v43  ;;  %v322_v60 = vshll.u32 %v321_v47, 23  ;;  %v499_v38 = vsel %vm485_vm1, %v496_v52, %v498_v57 }
  0x67   : > { %v446_v39 = vsel %vm444_vm10, %v1699_v30, %v445_v48  ;;  %vm232_vm2 = vweird.f32 %v1888_v11  ;;  %v491_v6 = vsel %vm485_vm1, %v488_v15, %v490_v4  ;;  %vm2191_vm3 = vcmp.le.f32.partialorder %v244_v41, 0.7853982 }
  0x68   : > { %v450_v0 = vsel %vm443_vm11, %v446_v39, %v449_v16  ;;  %v323_v36 = vor.u32 4788187, %v322_v60  ;;  %v326_v53 = vcvt.s32.f32 %v319_v40  ;;  %vm246_vm4 = vcmp.lt.s32.totalorder %v1890_v12, 0 }
  0x69   : > { %v451_v5 = vsel %vm440_vm12, nan, %v450_v0  ;;  %v2182_v28 = vmul.u32.u64.low %v500_v59, %v499_v38  ;;  %v2183_v17 = vmul.u32.u64.high %v500_v59, %v499_v38, %v2182_v28  ;;  %vm856_vm5 = vcmp.lt.s32.totalorder %v2102_v31, 2 }
  0x6a   : > { %1412 = vperm.xlu0 %1696, %v451_v5   ;;  %v2185_v34 = vmul.u32.u64.low %v500_v59, %v495_v63  ;;  %v2186_v9 = vmul.u32.u64.high %v500_v59, %v495_v63, %v2185_v34  ;;  %v324_v14 = vand.u32 2147483647, %v323_v36  ;;  %vm650_vm6 = vcmp.lt.s32.totalorder %v2122_v62, 2 }
  0x6b   : > { %vm651_vm7 = vcmp.eq.s32.totalorder %v2122_v62, 0  ;;  %vm857_vm8 = vcmp.eq.s32.totalorder %v2102_v31, 0  ;;  %vm860_vm9 = vcmp.eq.s32.totalorder %v2102_v31, 2  ;;  %vm654_vm10 = vcmp.eq.s32.totalorder %v2122_v62, 2 }
  0x6c   : > { %v327_v23 = vmul.f32 %v326_v53, %v324_v14  ;;  %v331_v41 = vsel %vm246_vm4, %v330_v3, %v2095_v20  ;;  %v507_v58 = vmul.u32 %v500_v59, %v491_v6  ;;  %vm236_vm11 = vcmp.eq.s32.totalorder %v234_v46, 0 }
  0x6d   : > { %v1703_v18 = vpop.eup %1702  ;;  %vm239_vm13 = vcmp.eq.s32.totalorder %v234_v46, 2  ;;  %vm509_vm14 = vc.u32 %v2183_v17, %v2185_v34  ;;  %v510_v2 = vadd.s32 1, %v2186_v9  ;;  %v859_v15 = vsel %vm857_vm8, %v1699_v30, %v445_v48 }
  0x6e   : > { %v1705_v19 = vpop.eup %1704  ;;  %v240_v42 = vxor.u32 2147483648, %v1703_v18  ;;  %v328_v35 = vxor.u32 2147483648, %v327_v23  ;;  %v862_v22 = vsel %vm860_vm9, %v448_v50, %v1701_v45  ;;  %vm235_vm15 = vcmp.lt.s32.totalorder %v234_v46, 2 }
  0x6f   : > { %v237_v20 = vxor.u32 2147483648, %v1705_v19  ;;  %v2214_v24 = vsel %vm2191_vm3, 0, %v331_v41  ;;  %v511_v25 = vsel %vm509_vm14, %v510_v2, %v2186_v9  ;;  %v863_v45 = vsel %vm856_vm5, %v859_v15, %v862_v22 }
  0x70   : > { %v241_v27 = vsel %vm239_vm13, %v240_v42, %v1705_v19  ;;  %v656_v26 = vsel %vm654_vm10, %v240_v42, %v1705_v19  ;;  %v329_v29 = vsel %vm246_vm4, %v328_v35, %v327_v23  ;;  %v512_v32 = vadd.s32 %v511_v25, %v507_v58 }
  0x71   : > { %v238_v30 = vsel %vm236_vm11, %v1703_v18, %v237_v20  ;;  %v653_v43 = vsel %vm651_vm7, %v1703_v18, %v237_v20  ;;  %v332_v33 = vsel %vm2191_vm3, %v1890_v12, %v329_v29  ;;  %v337_v47 = vadd.s32 3, %v2214_v24 }
  0x72   : > { %v242_v50 = vsel %vm235_vm15, %v238_v30, %v241_v27  ;;  %v657_v52 = vsel %vm650_vm6, %v653_v43, %v656_v26  ;;  %1706 = vcosq.f32 %v332_v33  ;;  %v513_v54 = vadd.s32 536870912, %v512_v32 }
  0x73   : > { %v243_v48 = vsel %vm232_vm2, nan, %v242_v50  ;;  %v658_v55 = vsel %vm232_vm2, nan, %v657_v52  ;;  %1708 = vsinq.f32 %v332_v33  ;;  %v864_v31 = vsel %vm440_vm12, nan, %v863_v45 }
  0x74   : > { %1402 = vperm.xlu1 %1697, %v243_v48   ;;  %1427 = vperm.xlu0 %1696, %v658_v55   ;;  %v514_v16 = vshrl.u32 %v513_v54, 30  ;;  %v338_v62 = vand.u32 3, %v337_v47  ;;  %vm336_vm3 = vweird.f32 %v1890_v12  ;;  %v508_v36 = vadd.s32 %v2185_v34, %v2183_v17 }
  0x75   : > { %v122_v23 = vand.u32 127, %v113_v1  ;;  %vm454_vm4 = vcmp.lt.s32.totalorder %v1898_v21, 0  ;;  %v752_v20 = vand.u32 3, %v2214_v24  ;;  %vm453_vm5 = vcmp.le.f32.partialorder %v452_v37, 0.7853982 }
  0x76   : > { %v515_v4 = vshll.u32 %v514_v16, 30  ;;  %vm343_vm0 = vcmp.eq.s32.totalorder %v338_v62, 2  ;;  %vm340_vm1 = vcmp.eq.s32.totalorder %v338_v62, 0  ;;  %vm339_vm2 = vcmp.lt.s32.totalorder %v338_v62, 2 }
  0x77   : > { %v538_v18 = vsub.s32 4, %v514_v16  ;;  %v123_v42 = vcvt.s32.f32 %v122_v23  ;;  %vm754_vm6 = vcmp.eq.s32.totalorder %v752_v20, 0  ;;  %vm757_vm7 = vcmp.eq.s32.totalorder %v752_v20, 2 }
  0x78   : > { %1437 = vperm.xlu0 %1696, %v864_v31   ;;  %v516_v57 = vsub.s32 %v512_v32, %v515_v4  ;;  %vm753_vm8 = vcmp.lt.s32.totalorder %v752_v20, 2  ;;  %vm544_vm10 = vweird.f32 %v1898_v21 }
  0x79   : > { %v539_v34 = vsel %vm454_vm4, %v538_v18, %v514_v16 }
  0x7a   : > { %v518_v59 = vsub.s32 0, %v516_v57  ;;  %v541_v27 = vsel %vm453_vm5, 0, %v539_v34 }
  0x7b   : > { %v545_v45 = vadd.s32 3, %v541_v27  ;;  %v2259_v52 = vand.u32 3, %v541_v27 }
  0x7c   : > { %v1707_v39 = vpop.eup %1706  ;;  %v1555_v40 = vmin.u32 %v518_v59, %v516_v57 }
  0x7d   : > { %v1709_v60 = vpop.eup %1708  ;;  %v344_v11 = vxor.u32 2147483648, %v1707_v39  ;;  %v546_v16 = vand.u32 3, %v545_v45  ;;  %vm960_vm11 = vcmp.eq.s32.totalorder %v2259_v52, 0  ;;  %vm963_vm15 = vcmp.eq.s32.totalorder %v2259_v52, 2 }
  0x7e   : > { %v341_v63 = vxor.u32 2147483648, %v1709_v60  ;;  %v520_v0 = vclz %v1555_v40 }
  0x7f   : > { %v345_v46 = vsel %vm343_vm0, %v344_v11, %v1709_v60  ;;  %v759_v55 = vsel %vm757_vm7, %v344_v11, %v1709_v60  ;;  %vm547_vm13 = vcmp.lt.s32.totalorder %v546_v16, 2  ;;  %vm548_vm14 = vcmp.eq.s32.totalorder %v546_v16, 0 }
  0x80   : > { %v342_v3 = vsel %vm340_vm1, %v1707_v39, %v341_v63  ;;  %v1556_v13 = vadd.s32 4294967294, %v520_v0  ;;  %v756_v48 = vsel %vm754_vm6, %v1707_v39, %v341_v63  ;;  %vm551_vm0 = vcmp.eq.s32.totalorder %v546_v16, 2 }
  0x81   : > { %v346_v38 = vsel %vm339_vm2, %v342_v3, %v345_v46  ;;  %v760_v59 = vsel %vm753_vm8, %v756_v48, %v759_v55  ;;  %vm959_vm1 = vcmp.lt.s32.totalorder %v2259_v52, 2 }
  0x82   : > { %v347_v5 = vsel %vm336_vm3, nan, %v346_v38  ;;  %vm1557_vm12 = vcmp.lt.s32.totalorder %v1556_v13, 0  ;;  %v761_v11 = vsel %vm336_vm3, nan, %v760_v59 }
  0x83   : > { %1407 = vperm.xlu1 %1697, %v347_v5   ;;  %v523_v53 = vsel %vm1557_vm12, 0, %v1556_v13 }
  0x84   : > { %v524_v6 = vsub.s32 32, %v523_v53  ;;  %v525_v28 = vshll.u32 %v516_v57, %v523_v53  ;;  %v528_v9 = vsub.s32 4294967266, %v523_v53 }
  0x86   : > { %v526_v10 = vshrl.u32 %v508_v36, %v524_v6  ;;  %v529_v14 = vadd.s32 127, %v528_v9 }
  0x88   : > { %v527_v41 = vor.u32 %v526_v10, %v525_v28  ;;  %v530_v58 = vshll.u32 %v529_v14, 23 }
  0x8a   : > { %v531_v2 = vor.u32 4788187, %v530_v58  ;;  %v534_v19 = vcvt.s32.f32 %v527_v41 }
  0x8c   : > { %v532_v35 = vand.u32 2147483647, %v531_v2 }
  0x8e   : > { %v535_v22 = vmul.f32 %v534_v19, %v532_v35 }
  0x8f   : > { %v970_v17 = vpop.permute.xlu0 %969 }
  0x90   : > { %v975_v15 = vrot.slane %v970_v17, %v1884_v7  ;;  %v536_v25 = vxor.u32 2147483648, %v535_v22 }
  0x92   : > { %v2249_v1 = vmul.f32 %v975_v15, %v123_v42  ;;  %v537_v30 = vsel %vm454_vm4, %v536_v25, %v535_v22 }
  0x93   : > { %v978_v26 = vpop.permute.xlu0 %977  ;;  %v540_v33 = vsel %vm453_vm5, %v1898_v21, %v537_v30 }
  0x94   : > { %v986_v29 = vand.u32 2147483647, %v2249_v1  ;;  %v989_v32 = vand.u32 2139095040, %v2249_v1  ;;  %v983_v43 = vrot.slane %v978_v26, %v1884_v7  ;;  %1710 = vcosq.f32 %v540_v33 }
  0x95   : > { %1712 = vsinq.f32 %v540_v33 }
  0x96   : > { %v990_v24 = vshrl.u32 %v989_v32, 23  ;;  %v993_v37 = vand.u32 8388607, %v986_v29  ;;  %v2257_v50 = vmul.f32 %v983_v43, %v123_v42 }
  0x98   : > { %v1574_v54 = vadd.s32 4294967169, %v990_v24  ;;  %v1090_v7 = vand.u32 2147483647, %v2257_v50  ;;  %v1093_v47 = vand.u32 2139095040, %v2257_v50  ;;  %v994_v4 = vor.u32 8388608, %v993_v37 }
  0x9a   : > { %v996_v31 = vadd.s32 1, %v1574_v54  ;;  %v1094_v62 = vshrl.u32 %v1093_v47, 23  ;;  %v2265_v57 = vand.u32 8388607, %v1090_v7  ;;  %v2273_v63 = vshll.u32 %v994_v4, 8 }
  0x9c   : > { %vm997_vm9 = vcmp.gt.s32.totalorder %v996_v31, 0  ;;  %v1578_v40 = vadd.s32 4294967169, %v1094_v62  ;;  %v1098_v0 = vor.u32 8388608, %v2265_v57 }
  0x9d   : > { %v998_v39 = vsel %vm997_vm9, %v996_v31, 0 }
  0x9e   : > { %v1000_v60 = vand.u32 31, %v998_v39  ;;  %v999_v46 = vshrl.u32 %v998_v39, 5  ;;  %v1711_v5 = vpop.eup %1710  ;;  %v1100_v6 = vadd.s32 1, %v1578_v40 }
  0x9f   : > { %v1713_v28 = vpop.eup %1712  ;;  %v552_v9 = vxor.u32 2147483648, %v1711_v5 }
  0xa0   : > { %v1001_v3 = vsub.s32 32, %v1000_v60  ;;  %v1003_v13 = vshll.u32 %v1803_v44, %v1000_v60  ;;  %v1006_v38 = vshll.u32 %v1804_v49, %v1000_v60  ;;  %v1009_v36 = vshll.u32 %v1805_v51, %v1000_v60 }
  0xa1   : > { %v1012_v53 = vshll.u32 %v1806_v56, %v1000_v60  ;;  %v1015_v12 = vshll.u32 %v1807_v61, %v1000_v60  ;;  %v549_v41 = vxor.u32 2147483648, %v1713_v28  ;;  %v553_v19 = vsel %vm551_vm0, %v552_v9, %v1713_v28 }
  0xa2   : > { %v1002_v10 = vshrl.u32 %v1803_v44, %v1001_v3  ;;  %v1004_v14 = vshrl.u32 %v1804_v49, %v1001_v3  ;;  %v1007_v23 = vshrl.u32 %v1805_v51, %v1001_v3  ;;  %v1010_v58 = vshrl.u32 %v1806_v56, %v1001_v3 }
  0xa3   : > { %v1013_v18 = vshrl.u32 %v1807_v61, %v1001_v3  ;;  %v1016_v2 = vshrl.u32 %v1808_v8, %v1001_v3  ;;  %vm1018_vm2 = vcmp.lt.s32.totalorder %v999_v46, 1  ;;  %v550_v17 = vsel %vm548_vm14, %v1711_v5, %v549_v41 }
  0xa4   : > { %v1005_v42 = vor.u32 %v1004_v14, %v1003_v13  ;;  %v1008_v35 = vor.u32 %v1007_v23, %v1006_v38  ;;  %v1011_v34 = vor.u32 %v1010_v58, %v1009_v36  ;;  %vm1019_vm3 = vcmp.lt.s32.totalorder %v999_v46, 2 }
  0xa5   : > { %v1014_v15 = vor.u32 %v1013_v18, %v1012_v53  ;;  %v554_v22 = vsel %vm547_vm13, %v550_v17, %v553_v19  ;;  %v965_v20 = vsel %vm963_vm15, %v552_v9, %v1713_v28  ;;  %v1017_v25 = vor.u32 %v1016_v2, %v1015_v12 }
  0xa6   : > { %vm1020_vm12 = vcmp.lt.s32.totalorder %v999_v46, 3  ;;  %v555_v27 = vsel %vm544_vm10, nan, %v554_v22  ;;  %v962_v26 = vsel %vm960_vm11, %v1711_v5, %v549_v41  ;;  %vm1021_vm4 = vcmp.lt.s32.totalorder %v999_v46, 4 }
  0xa7   : > { %v1022_v32 = vsel %vm1018_vm2, %v1002_v10, %v1005_v42  ;;  %1417 = vperm.xlu1 %1697, %v555_v27   ;;  %v1023_v30 = vsel %vm1021_vm4, %v1011_v34, 2102212464  ;;  %v1026_v43 = vsel %vm1018_vm2, %v1005_v42, %v1008_v35  ;;  %v1027_v33 = vsel %vm1021_vm4, %v1014_v15, 920167782 }
  0xa8   : > { %v1030_v45 = vsel %vm1018_vm2, %v1008_v35, %v1011_v34  ;;  %v1024_v24 = vsel %vm1020_vm12, %v1008_v35, %v1023_v30  ;;  %v1028_v37 = vsel %vm1020_vm12, %v1011_v34, %v1027_v33  ;;  %v1031_v54 = vsel %vm1021_vm4, %v1017_v25, 1326507024 }
  0xa9   : > { %vm1101_vm5 = vcmp.gt.s32.totalorder %v1100_v6, 0  ;;  %v966_v48 = vsel %vm959_vm1, %v962_v26, %v965_v20  ;;  %v1029_v55 = vsel %vm1019_vm3, %v1026_v43, %v1028_v37  ;;  %v1032_v47 = vsel %vm1020_vm12, %v1014_v15, %v1031_v54 }
  0xaa   : > { %v1102_v16 = vsel %vm1101_vm5, %v1100_v6, 0  ;;  %v1025_v31 = vsel %vm1019_vm3, %v1022_v32, %v1024_v24  ;;  %v1033_v4 = vsel %vm1019_vm3, %v1030_v45, %v1032_v47  ;;  %v967_v60 = vsel %vm544_vm10, nan, %v966_v48 }
  0xab   : > { %v2308_v62 = vmul.u32.u64.low %v2273_v63, %v1029_v55  ;;  %v2309_v57 = vmul.u32.u64.high %v2273_v63, %v1029_v55, %v2308_v62  ;;  %1432 = vperm.xlu1 %1697, %v761_v11   ;;  %v2313_v59 = vmul.u32.u64.low %v2273_v63, %v1033_v4  ;;  %v2314_v39 = vmul.u32.u64.high %v2273_v63, %v1033_v4, %v2313_v59 }
  0xac   : > { %v1103_v52 = vshrl.u32 %v1102_v16, 5  ;;  %v1104_v40 = vand.u32 31, %v1102_v16  ;;  %v1041_v3 = vmul.u32 %v2273_v63, %v1025_v31  ;;  %v1138_v38 = vshll.u32 %v1098_v0, 8 }
  0xad   : > { %v1044_v5 = vadd.s32 1, %v2309_v57  ;;  %vm1043_vm6 = vc.u32 %v2314_v39, %v2308_v62  ;;  %vm988_vm14 = vcmp.lt.s32.totalorder %v2249_v1, 0  ;;  %vm987_vm0 = vcmp.le.f32.partialorder %v986_v29, 0.7853982 }
  0xae   : > { %v1105_v13 = vsub.s32 32, %v1104_v40  ;;  %v1107_v46 = vshll.u32 %v1803_v44, %v1104_v40  ;;  %v1110_v36 = vshll.u32 %v1804_v49, %v1104_v40  ;;  %v1113_v11 = vshll.u32 %v1805_v51, %v1104_v40 }
  0xaf   : > { %v1116_v53 = vshll.u32 %v1806_v56, %v1104_v40  ;;  %1442 = vperm.xlu1 %1697, %v967_v60   ;;  %v1119_v63 = vshll.u32 %v1807_v61, %v1104_v40  ;;  %vm1122_vm7 = vcmp.lt.s32.totalorder %v1103_v52, 1  ;;  %v1045_v12 = vsel %vm1043_vm6, %v1044_v5, %v2309_v57 }
  0xb0   : > { %v1108_v21 = vshrl.u32 %v1804_v49, %v1105_v13  ;;  %v1111_v0 = vshrl.u32 %v1805_v51, %v1105_v13  ;;  %v1114_v6 = vshrl.u32 %v1806_v56, %v1105_v13  ;;  %v1117_v28 = vshrl.u32 %v1807_v61, %v1105_v13 }
  0xb1   : > { %v1046_v9 = vadd.s32 %v1045_v12, %v1041_v3  ;;  %v1106_v10 = vshrl.u32 %v1803_v44, %v1105_v13  ;;  %v1120_v23 = vshrl.u32 %v1808_v8, %v1105_v13  ;;  %vm1124_vm8 = vcmp.lt.s32.totalorder %v1103_v52, 3 }
  0xb2   : > { %v1109_v14 = vor.u32 %v1108_v21, %v1107_v46  ;;  %v1112_v41 = vor.u32 %v1111_v0, %v1110_v36  ;;  %v1115_v58 = vor.u32 %v1114_v6, %v1113_v11  ;;  %v1118_v49 = vor.u32 %v1117_v28, %v1116_v53 }
  0xb3   : > { %v1047_v18 = vadd.s32 536870912, %v1046_v9  ;;  %v1121_v2 = vor.u32 %v1120_v23, %v1119_v63  ;;  %vm1123_vm9 = vcmp.lt.s32.totalorder %v1103_v52, 2  ;;  %vm1125_vm10 = vcmp.lt.s32.totalorder %v1103_v52, 4 }
  0xb4   : > { %v1127_v19 = vsel %vm1125_vm10, %v1115_v58, 2102212464  ;;  %v1130_v51 = vsel %vm1122_vm7, %v1109_v14, %v1112_v41  ;;  %v1131_v56 = vsel %vm1125_vm10, %v1118_v49, 920167782  ;;  %v1134_v61 = vsel %vm1122_vm7, %v1112_v41, %v1115_v58 }
  0xb5   : > { %v1048_v42 = vshrl.u32 %v1047_v18, 30  ;;  %v1132_v44 = vsel %vm1124_vm8, %v1115_v58, %v1131_v56  ;;  %v1135_v35 = vsel %vm1125_vm10, %v1121_v2, 1326507024  ;;  %v1126_v15 = vsel %vm1122_vm7, %v1106_v10, %v1109_v14 }
  0xb6   : > { %v1133_v8 = vsel %vm1123_vm9, %v1130_v51, %v1132_v44  ;;  %v1136_v17 = vsel %vm1124_vm8, %v1118_v49, %v1135_v35  ;;  %v1128_v22 = vsel %vm1124_vm8, %v1112_v41, %v1127_v19  ;;  %v1042_v57 = vadd.s32 %v2308_v62, %v2314_v39 }
  0xb7   : > { %v1049_v34 = vshll.u32 %v1048_v42, 30  ;;  %v1137_v20 = vsel %vm1123_vm9, %v1134_v61, %v1136_v17  ;;  %v2345_v26 = vmul.u32.u64.low %v1138_v38, %v1133_v8  ;;  %v2346_v32 = vmul.u32.u64.high %v1138_v38, %v1133_v8, %v2345_v26 }
  0xb8   : > { %v2342_v25 = vmul.u32.u64.low %v1138_v38, %v1137_v20  ;;  %v2343_v27 = vmul.u32.u64.high %v1138_v38, %v1137_v20, %v2342_v25  ;;  %v1129_v33 = vsel %vm1123_vm9, %v1126_v15, %v1128_v22  ;;  %v1072_v12 = vsub.s32 4, %v1048_v42 }
  0xb9   : > { %v1050_v30 = vsub.s32 %v1046_v9, %v1049_v34  ;;  %v1148_v45 = vadd.s32 1, %v2346_v32  ;;  %v1145_v37 = vmul.u32 %v1138_v38, %v1129_v33  ;;  %vm1420_vm1 = vcmask 130048  }
  0xba   : > { %vm1147_vm11 = vc.u32 %v2343_v27, %v2345_v26  ;;  %v1073_v39 = vsel %vm988_vm14, %v1072_v12, %v1048_v42  ;;  %v1146_v23 = vadd.s32 %v2345_v26, %v2343_v27  ;;  %vm2366_vm2 = vcmp.le.f32.partialorder %v1090_v7, 0.7853982 }
  0xbb   : > { %v1052_v43 = vsub.s32 0, %v1050_v30  ;;  %v1149_v54 = vsel %vm1147_vm11, %v1148_v45, %v2346_v32  ;;  %v1075_v49 = vsel %vm987_vm0, 0, %v1073_v39  ;;  %vm1092_vm3 = vcmp.lt.s32.totalorder %v2257_v50, 0 }
  0xbc   : > { %v1150_v55 = vadd.s32 %v1149_v54, %v1145_v37  ;;  %v1079_v61 = vadd.s32 3, %v1075_v49  ;;  %v1287_v42 = vand.u32 3, %v1075_v49  ;;  %vm1078_vm9 = vweird.f32 %v2249_v1 }
  0xbd   : > { %v1575_v24 = vmin.u32 %v1052_v43, %v1050_v30 }
  0xbe   : > { %v1151_v16 = vadd.s32 536870912, %v1150_v55  ;;  %v1080_v8 = vand.u32 3, %v1079_v61  ;;  %vm1288_vm12 = vcmp.lt.s32.totalorder %v1287_v42, 2  ;;  %vm1289_vm4 = vcmp.eq.s32.totalorder %v1287_v42, 0 }
  0xbf   : > { %v1054_v48 = vclz %v1575_v24  ;;  %vm1292_vm7 = vcmp.eq.s32.totalorder %v1287_v42, 2 }
  0xc0   : > { %v2352_v4 = vshrl.u32 %v1151_v16, 30  ;;  %vm1082_vm5 = vcmp.eq.s32.totalorder %v1080_v8, 0  ;;  %vm1085_vm6 = vcmp.eq.s32.totalorder %v1080_v8, 2  ;;  %vm1081_vm8 = vcmp.lt.s32.totalorder %v1080_v8, 2 }
  0xc1   : > { %v1576_v47 = vadd.s32 4294967294, %v1054_v48 }
  0xc2   : > { %v1153_v40 = vshll.u32 %v2352_v4, 30  ;;  %v1176_v34 = vsub.s32 4, %v2352_v4 }
  0xc3   : > { %vm1577_vm13 = vcmp.lt.s32.totalorder %v1576_v47, 0 }
  0xc4   : > { %v1057_v31 = vsel %vm1577_vm13, 0, %v1576_v47  ;;  %v1154_v46 = vsub.s32 %v1150_v55, %v1153_v40  ;;  %v1177_v7 = vsel %vm1092_vm3, %v1176_v34, %v2352_v4 }
  0xc5   : > { %v1058_v59 = vsub.s32 32, %v1057_v31  ;;  %v1062_v52 = vsub.s32 4294967266, %v1057_v31  ;;  %v1059_v60 = vshll.u32 %v1050_v30, %v1057_v31  ;;  %v1179_v47 = vsel %vm2366_vm2, 0, %v1177_v7 }
  0xc6   : > { %v1156_v36 = vsub.s32 0, %v1154_v46  ;;  %v1390_v4 = vand.u32 3, %v1179_v47 }
  0xc7   : > { %v1060_v3 = vshrl.u32 %v1042_v57, %v1058_v59  ;;  %v1063_v13 = vadd.s32 127, %v1062_v52 }
  0xc8   : > { %v1579_v53 = vmin.u32 %v1156_v36, %v1154_v46  ;;  %vm1395_vm11 = vcmp.eq.s32.totalorder %v1390_v4, 2 }
  0xc9   : > { %v1061_v38 = vor.u32 %v1060_v3, %v1059_v60  ;;  %v1064_v5 = vshll.u32 %v1063_v13, 23 }
  0xca   : > { %v1158_v0 = vclz %v1579_v53 }
  0xcb   : > { %v1065_v11 = vor.u32 4788187, %v1064_v5  ;;  %v1068_v63 = vcvt.s32.f32 %v1061_v38 }
  0xcc   : > { %v1580_v28 = vadd.s32 4294967294, %v1158_v0 }
  0xcd   : > { %v1066_v21 = vand.u32 2147483647, %v1065_v11 }
  0xce   : > { %vm1581_vm15 = vcmp.lt.s32.totalorder %v1580_v28, 0 }
  0xcf   : > { %v1069_v6 = vmul.f32 %v1068_v63, %v1066_v21  ;;  %v1161_v10 = vsel %vm1581_vm15, 0, %v1580_v28 }
  0xd0   : > { %v1162_v41 = vsub.s32 32, %v1161_v10  ;;  %v1166_v58 = vsub.s32 4294967266, %v1161_v10  ;;  %v1163_v18 = vshll.u32 %v1154_v46, %v1161_v10 }
  0xd1   : > { %v1070_v62 = vxor.u32 2147483648, %v1069_v6 }
  0xd2   : > { %v1164_v2 = vshrl.u32 %v1146_v23, %v1162_v41  ;;  %v1167_v19 = vadd.s32 127, %v1166_v58 }
  0xd3   : > { %v1071_v9 = vsel %vm988_vm14, %v1070_v62, %v1069_v6  ;;  %vm1392_vm14 = vcmp.eq.s32.totalorder %v1390_v4, 0 }
  0xd4   : > { %v1074_v14 = vsel %vm987_vm0, %v2249_v1, %v1071_v9  ;;  %v1165_v51 = vor.u32 %v1164_v2, %v1163_v18  ;;  %v1168_v56 = vshll.u32 %v1167_v19, 23  ;;  %v1183_v1 = vadd.s32 3, %v1179_v47 }
  0xd5   : > { %1714 = vcosq.f32 %v1074_v14  ;;  %vm1391_vm0 = vcmp.lt.s32.totalorder %v1390_v4, 2 }
  0xd6   : > { %1716 = vsinq.f32 %v1074_v14  ;;  %v1169_v29 = vor.u32 4788187, %v1168_v56  ;;  %v1172_v35 = vcvt.s32.f32 %v1165_v51  ;;  %v1184_v31 = vand.u32 3, %v1183_v1 }
  0xd8   : > { %v1170_v44 = vand.u32 2147483647, %v1169_v29  ;;  %vm1189_vm10 = vcmp.eq.s32.totalorder %v1184_v31, 2  ;;  %vm1186_vm13 = vcmp.eq.s32.totalorder %v1184_v31, 0  ;;  %vm1185_vm15 = vcmp.lt.s32.totalorder %v1184_v31, 2 }
  0xda   : > { %v1173_v17 = vmul.f32 %v1172_v35, %v1170_v44 }
  0xdc   : > { %v1174_v27 = vxor.u32 2147483648, %v1173_v17 }
  0xde   : > { %v1175_v43 = vsel %vm1092_vm3, %v1174_v27, %v1173_v17 }
  0xdf   : > { %v1715_v15 = vpop.eup %1714  ;;  %v1178_v24 = vsel %vm2366_vm2, %v2257_v50, %v1175_v43  ;;  %vm1182_vm2 = vweird.f32 %v2257_v50 }
  0xe0   : > { %v1717_v20 = vpop.eup %1716  ;;  %v1086_v25 = vxor.u32 2147483648, %v1715_v15  ;;  %1718 = vcosq.f32 %v1178_v24 }
  0xe1   : > { %v1083_v26 = vxor.u32 2147483648, %v1717_v20  ;;  %1720 = vsinq.f32 %v1178_v24 }
  0xe2   : > { %v1087_v32 = vsel %vm1085_vm6, %v1086_v25, %v1717_v20  ;;  %v1294_v30 = vsel %vm1292_vm7, %v1086_v25, %v1717_v20 }
  0xe3   : > { %v1084_v33 = vsel %vm1082_vm5, %v1715_v15, %v1083_v26  ;;  %v1291_v45 = vsel %vm1289_vm4, %v1715_v15, %v1083_v26 }
  0xe4   : > { %v1088_v37 = vsel %vm1081_vm8, %v1084_v33, %v1087_v32  ;;  %v1295_v54 = vsel %vm1288_vm12, %v1291_v45, %v1294_v30 }
  0xe5   : > { %v1089_v48 = vsel %vm1078_vm9, nan, %v1088_v37  ;;  %v1296_v55 = vsel %vm1078_vm9, nan, %v1295_v54 }
  0xe6   : > { %1594 = vst.msk [vmem:[%s2381_s26 + $0x40] sm:$0xff] %vm1420_vm1, %v1089_v48  ;;  %1595 = vst.msk [vmem:[%s2381_s26 + $0x48] sm:$0xff] %vm1420_vm1, %v1089_v48 }
  0xe7   : > { %1598 = vst.msk [vmem:[%s2381_s26 + $0x60] sm:$0xff] %vm1420_vm1, %v1296_v55  ;;  %1599 = vst.msk [vmem:[%s2381_s26 + $0x68] sm:$0xff] %vm1420_vm1, %v1296_v55 }
  0xe9   : > { %v1413_v16 = vpop.permute.xlu0 %1412 }
  0xea   : > { %1423 = vst.msk [vmem:[%s2381_s26 + $0x10] sm:$0xff] %vm1420_vm1, %v1413_v16  ;;  %v1719_v57 = vpop.eup %1718 }
  0xeb   : > { %v1721_v59 = vpop.eup %1720  ;;  %v1190_v52 = vxor.u32 2147483648, %v1719_v57 }
  0xec   : > { %v1187_v40 = vxor.u32 2147483648, %v1721_v59 }
  0xed   : > { %v1191_v60 = vsel %vm1189_vm10, %v1190_v52, %v1721_v59  ;;  %v1397_v3 = vsel %vm1395_vm11, %v1190_v52, %v1721_v59 }
  0xee   : > { %v1188_v13 = vsel %vm1186_vm13, %v1719_v57, %v1187_v40  ;;  %v1394_v46 = vsel %vm1392_vm14, %v1719_v57, %v1187_v40 }
  0xef   : > { %v1192_v38 = vsel %vm1185_vm15, %v1188_v13, %v1191_v60  ;;  %v1398_v5 = vsel %vm1391_vm0, %v1394_v46, %v1397_v3 }
  0xf0   : > { %v1193_v36 = vsel %vm1182_vm2, nan, %v1192_v38  ;;  %v1399_v11 = vsel %vm1182_vm2, nan, %v1398_v5 }
  0xf1   : > { %1596 = vst.msk [vmem:[%s2381_s26 + $0x50] sm:$0xff] %vm1420_vm1, %v1193_v36  ;;  %1597 = vst.msk [vmem:[%s2381_s26 + $0x58] sm:$0xff] %vm1420_vm1, %v1193_v36 }
  0xf2   : > { %1600 = vst.msk [vmem:[%s2381_s26 + $0x70] sm:$0xff] %vm1420_vm1, %v1399_v11  ;;  %1601 = vst.msk [vmem:[%s2381_s26 + $0x78] sm:$0xff] %vm1420_vm1, %v1399_v11 }
  0xf3   : > { %v1403_v53 = vpop.permute.xlu1 %1402  ;;  %v1428_v21 = vpop.permute.xlu0 %1427 }
  0xf4   : > { %1421 = vst.msk [vmem:[%s2381_s26] sm:$0xff] %vm1420_vm1, %v1403_v53  ;;  %1590 = vst.msk [vmem:[%s2381_s26 + $0x20] sm:$0xff] %vm1420_vm1, %v1428_v21 }
  0xf7   : > { %v1438_v50 = vpop.permute.xlu0 %1437 }
  0xf8   : > { %1592 = vst.msk [vmem:[%s2381_s26 + $0x30] sm:$0xff] %vm1420_vm1, %v1438_v50 }
 0x102   : > { %v1408_v63 = vpop.permute.xlu1 %1407 }
 0x103   : > { %1422 = vst.msk [vmem:[%s2381_s26 + $0x8] sm:$0xff] %vm1420_vm1, %v1408_v63 }
 0x126   : > { %v1418_v12 = vpop.permute.xlu1 %1417 }
 0x127   : > { %1424 = vst.msk [vmem:[%s2381_s26 + $0x18] sm:$0xff] %vm1420_vm1, %v1418_v12 }
 0x12a   : > { %v1433_v0 = vpop.permute.xlu1 %1432 }
 0x12b   : > { %1591 = vst.msk [vmem:[%s2381_s26 + $0x28] sm:$0xff] %vm1420_vm1, %v1433_v0 }
 0x12e   : > { %v1443_v6 = vpop.permute.xlu1 %1442 }
 0x12f   : > { %1593 = vst.msk [vmem:[%s2381_s26 + $0x38] sm:$0xff] %vm1420_vm1, %v1443_v6 }
 0x130   : > { %1735 = shalt.err (!%p1732_p3)
}
 0x131   : > { %s1736_s13 = scalar_lea.hbm %s2419_s2, 2048  ;;  %s1740_s20 = scalar_lea.hbm %s2474_s1, 4096 }
 0x132   : > { %p1737_p5 = scmp.ne.s32.totalorder %s2419_s2, %s1736_s13  ;;  %p1741_p9 = scmp.lt.u32.totalorder %s2419_s2, %s2474_s1 }
 0x133   : > { %p1742_p10 = scmp.lt.u32.totalorder %s1740_s20, %s1736_s13  ;;  %p1744_p12 = scmp.lt.u32.totalorder %s1736_s13, %s2419_s2 }
 0x134   : > { %p1738_p6 = pnand %p1737_p5, %p1862_p4 }
 0x135   : > { %p1743_p11 = por %p1742_p10, %p1741_p9 }
 0x136   : > { %p1739_p7 = pneg %p1738_p6 }
 0x137   : > { %p1745_p13 = por %p1744_p12, %p1743_p11 }
 0x139   : > { %p1746_p0 = pnand %p1745_p13, %p1739_p7 }
 0x13b   : > { %1749 = shalt.err (!%p1746_p0)
}
 0x13c   : > { %s1810_s23 = smov 128   ;;  %s1811_s24 = smov 8  }
 0x13d   : > { %1632 = dma.vmem_to_hbm [thread:$0]  (%p1862_p4), %s2421_s28, 2048, %s2419_s2, %s2427_s3, %s1810_s23, %s1810_s23, %s1811_s24  }
 0x13e PF: > { %p1638_p1 = scmp.ge.s32.totalorder %s1800_s11, 2  ;;  %s1491_s25 = sand.u32 1, %s1780_s6  }
 0x13f   : > { %s1492_s26 = scalar_lea.sflag [#allocation3], %s1491_s25 }
 0x140   : > { %p1635_p2 = pnand %p1638_p1, %p1869_p8 }
 0x142   : > { %1775 = dma.done.wait (!%p1635_p2), %s1492_s26, 2048  }
 0x143   : > { %1777 = vsyncadd (!%p1635_p2), %s1492_s26, 4294965248  ;;  %s14_s11 = sadd.s32 1, %s1800_s11   ;;  %s2485_s6 = smov %s1784_s7 }
 0x144   : > { %p11_p3 = scmp.ge.s32.totalorder %s14_s11, 4   ;;  %s2486_s7 = smov %s1788_s8 }
 0x145   : > { %s2487_s8 = smov %s1875_s19  ;;  %s2488_s9 = smov %s1796_s10 }
 0x146   : > { %s2489_s10 = smov %s2491_s14  ;;  %13 = sbr.rel (!%p11_p3) target bundleno = 4 (0x4), region = 59 }
 0x14d   :  { %1497 = vsyncpa [#allocation3], 1 }
 0x14e   :  { %1499 = vsyncpa [#allocation3 + $0x1], 1 }

</bundles_post_ra>
